<compile_context>
chip_gen: v6e
topology: v6e:2x2x1
jax: 0.10.0
libtpu: 0.0.40
codegen_flags: <defaults>
</compile_context>

<pallas_src>
import jax
import jax.numpy as jnp
from jax.experimental import pallas as pl
from jax.experimental.pallas import tpu as pltpu


# ----------------------------------------------------------------------------
# Activations (match torch semantics; elu uses expm1 to avoid exp overflow)
# ----------------------------------------------------------------------------
def _apply_activation(y, activation):
    if activation == "relu":
        return jnp.maximum(y, 0.0)
    elif activation == "tanh":
        return jnp.tanh(y)
    elif activation == "sigmoid":
        return jax.nn.sigmoid(y)
    elif activation == "elu":
        return jnp.where(y > 0, y, jnp.expm1(jnp.minimum(y, 0.0)))
    else:  # 'none'
        return y


# ----------------------------------------------------------------------------
# Fused Pallas kernel: all NASLayers for one graph of the batch per grid step
#   refs = [x(1,N,Fin), a_hat(N,N), deg(N,1), inv_deg(N,1),
#           (w, b_row) * n_layers, out(1,N,PAD)]
# ----------------------------------------------------------------------------
def _make_gnn_kernel(layer_meta):
    """layer_meta: list of static dicts {aggregation, activation, agg_first}.
    The per-layer loop is unrolled at trace time, so every branch is static."""

    def kernel(x_ref, a_ref, deg_ref, invdeg_ref, *rest):
        o_ref = rest[-1]
        a = a_ref[...]                       # (N, N) bf16, shared by all layers
        deg = deg_ref[...]                   # (N, 1) f32
        inv_deg = invdeg_ref[...]            # (N, 1) f32
        h = x_ref[0]                         # (N, F_in) f32, this graph's nodes

        for li, meta in enumerate(layer_meta):
            w = rest[2 * li][...]            # (F_in_l, F_out_l) bf16, heads packed
            b_row = rest[2 * li + 1][...]    # (1, F_out_l) f32

            if meta["agg_first"]:
                # (A @ H) @ W : the N x N matmul runs at the narrow input width
                g = jnp.dot(a, h.astype(jnp.bfloat16),
                            preferred_element_type=jnp.float32)
                if meta["aggregation"] == "mean":
                    g = g * inv_deg
                h = jnp.dot(g.astype(jnp.bfloat16), w,
                            preferred_element_type=jnp.float32)
            else:
                # A @ (H @ W) : better when the layer shrinks the feature dim
                h = jnp.dot(h.astype(jnp.bfloat16), w,
                            preferred_element_type=jnp.float32)
                h = jnp.dot(a, h.astype(jnp.bfloat16),
                            preferred_element_type=jnp.float32)
                if meta["aggregation"] == "mean":
                    h = h * inv_deg

            # Bias folded through the (linear) aggregation:
            #   A@(XW + 1 b) = (A@X)@W + deg*b ;  mean-normalized: ... + b
            if meta["aggregation"] == "add":
                h = h + deg * b_row
            else:
                h = h + b_row
            h = _apply_activation(h, meta["activation"])    # f32 elementwise

        o_ref[0] = h.astype(o_ref.dtype)                    # lane-dense store

    return kernel


# ----------------------------------------------------------------------------
# Host-side glue: graph densification, head/bias packing, parameter init
# ----------------------------------------------------------------------------
def build_dense_adjacency(edge_index, num_nodes):
    """A_hat[dst, src] with add_self_loops, duplicate edges counted (PyG 'add')."""
    src, dst = edge_index[0], edge_index[1]
    a = jnp.zeros((num_nodes, num_nodes), jnp.float32).at[dst, src].add(1.0)
    return a + jnp.eye(num_nodes, dtype=jnp.float32)


def init_gnn_params(key, gnn_graph):
    """torch.nn.Linear default init: U(-1/sqrt(fan_in), 1/sqrt(fan_in))."""
    params = []
    for layer in gnn_graph:
        f_in, f_out, heads = layer["in_features"], layer["out_features"], layer["heads"]
        key, kw, kb = jax.random.split(key, 3)
        bound = 1.0 / (f_in ** 0.5)
        w = jax.random.uniform(kw, (heads, f_in, f_out), jnp.float32, -bound, bound)
        b = jax.random.uniform(kb, (heads, 1, f_out), jnp.float32, -bound, bound)
        params.append({"w": w, "b": b})
    return params


def _pack_layers(params, gnn_graph):
    """Pack per-head weights into one matmul/layer (bf16), keep rank-1 biases
    (f32), pick per-layer matmul order, pad the final layer to 128 lanes."""
    layer_inputs = []
    meta = []
    n_layers = len(gnn_graph)
    final_dim = None
    for i, (layer, p) in enumerate(zip(gnn_graph, params)):
        heads = layer["heads"]
        w, b = p["w"], p["b"]                                 # (H,Fi,Fo), (H,1,Fo)
        if layer["concat"]:
            w_eff = jnp.concatenate([w[h] for h in range(heads)], axis=1)
            b_row = jnp.concatenate([b[h] for h in range(heads)], axis=1)
        else:
            # constant attention + linear aggregation => head-mean commutes
            w_eff = jnp.mean(w, axis=0)
            b_row = jnp.mean(b, axis=0)

        agg = layer["aggregation"]
        if agg not in ("add", "mean"):
            # TODO(synk): 'max' aggregation (and 'gcn'/'gat' attention) are not
            # linear in the adjacency and are not instantiated in this graph.
            raise NotImplementedError("aggregation %r not lowered" % agg)

        f_in, f_out = w_eff.shape
        if i == n_layers - 1:
            final_dim = f_out
            padded = 128 * pl.cdiv(f_out, 128)                # lane-dense final store
            if padded != f_out:
                w_eff = jnp.pad(w_eff, ((0, 0), (0, padded - f_out)))
                b_row = jnp.pad(b_row, ((0, 0), (0, padded - f_out)))
                f_out = padded

        meta.append(dict(aggregation=agg,
                         activation=layer["activation"],
                         agg_first=f_in < f_out))             # associativity choice
        layer_inputs += [w_eff.astype(jnp.bfloat16), b_row.astype(jnp.float32)]
    return layer_inputs, meta, final_dim


def gnn_forward_batched(xb, edge_index, params, gnn_graph):
    """xb: (B, N, F_in) — B independent graphs sharing edge_index topology."""
    B, n, f_in = xb.shape
    a_hat = build_dense_adjacency(edge_index, n)              # f32, exact ints
    deg = jnp.sum(a_hat, axis=1, keepdims=True)               # in-degree incl. self loop
    inv_deg = 1.0 / deg

    layer_inputs, meta, final_dim = _pack_layers(params, gnn_graph)
    pad_dim = layer_inputs[-1].shape[1]                       # >= 128, lane-dense

    inputs = [xb.astype(jnp.float32),
              a_hat.astype(jnp.bfloat16),                     # single adjacency copy
              deg, inv_deg] + layer_inputs

    # advisory cost estimate for XLA scheduling (uses the chosen matmul order)
    flops, transc = 0, 0
    weights = layer_inputs[0::2]
    for w_eff, m in zip(weights, meta):
        fi, fo = w_eff.shape
        if m["agg_first"]:
            flops += B * (2 * n * n * fi + 2 * n * fi * fo)
        else:
            flops += B * (2 * n * fi * fo + 2 * n * n * fo)
        if m["activation"] in ("tanh", "sigmoid", "elu"):
            transc += B * n * fo
    bytes_accessed = sum(int(a.size) * a.dtype.itemsize for a in inputs)
    bytes_accessed += B * n * pad_dim * 4

    def shared_spec(arr):
        nd = arr.ndim
        return pl.BlockSpec(arr.shape, lambda b, _nd=nd: (0,) * _nd)

    in_specs = ([pl.BlockSpec((1, n, f_in), lambda b: (b, 0, 0))] +
                [shared_spec(a) for a in inputs[1:]])
    out_specs = pl.BlockSpec((1, n, pad_dim), lambda b: (b, 0, 0))

    kernel = _make_gnn_kernel(meta)

    # TODO(synk): at large N, tile A_hat with a reduction grid axis + f32 VMEM
    # accumulator; budget double-buffered tiles against 64 MiB VMEM on v7x
    # (about half the node tile that fits v5e/v6e) and keep operands bf16.
    out_padded = pl.pallas_call(
        kernel,
        out_shape=jax.ShapeDtypeStruct((B, n, pad_dim), jnp.float32),
        grid=(B,),
        in_specs=in_specs,
        out_specs=out_specs,
        compiler_params=pltpu.CompilerParams(
            dimension_semantics=("parallel",)),               # v7x: split graphs over TCs
        cost_estimate=pl.CostEstimate(
            flops=flops, transcendentals=transc, bytes_accessed=bytes_accessed),
    )(*inputs)

    return out_padded[:, :, :final_dim]


def gnn_forward(x, edge_index, params, gnn_graph):
    """Single-graph forward matching the PyTorch module signature (B == 1)."""
    return gnn_forward_batched(x[None], edge_index, params, gnn_graph)[0]


# ----------------------------------------------------------------------------
# Pure-JAX f32 reference mirroring the PyTorch per-head semantics (eval, dropout=0)
# ----------------------------------------------------------------------------
def gnn_forward_reference(x, edge_index, params, gnn_graph):
    n = x.shape[0]
    a_hat = build_dense_adjacency(edge_index, n)
    deg = jnp.sum(a_hat, axis=1, keepdims=True)
    for layer, p in zip(gnn_graph, params):
        outs = []
        for h in range(layer["heads"]):
            hfeat = x @ p["w"][h] + p["b"][h]
            agg = a_hat @ hfeat
            if layer["aggregation"] == "mean":
                agg = agg / deg
            outs.append(agg)
        if layer["concat"]:
            y = jnp.concatenate(outs, axis=1)
        else:
            y = sum(outs) / len(outs)
        x = _apply_activation(y, layer["activation"])
    return x


# ----------------------------------------------------------------------------
if __name__ == "__main__":
    N_NODES = 16
    F_IN = 16
    BATCH = 4          # batch of independent graphs -> fills the kernel with work

    gnn_graph = [
        dict(in_features=F_IN, out_features=32, aggregation="add",
             attention="constant", activation="relu", heads=2, concat=True),
        dict(in_features=64, out_features=8, aggregation="mean",
             attention="constant", activation="tanh", heads=2, concat=False),
    ]

    key = jax.random.PRNGKey(0)
    key, kx = jax.random.split(key)
    xb = jax.random.normal(kx, (BATCH, N_NODES, F_IN), jnp.float32)

    # deterministic bidirectional ring graph (no explicit self loops)
    idx = jnp.arange(N_NODES, dtype=jnp.int32)
    nxt = (idx + 1) % N_NODES
    src = jnp.concatenate([idx, nxt])
    dst = jnp.concatenate([nxt, idx])
    edge_index = jnp.stack([src, dst], axis=0)                # (2, 32)

    params = init_gnn_params(key, gnn_graph)

    # batched kernel call (main path)
    out = gnn_forward_batched(xb, edge_index, params, gnn_graph)
    out = jax.block_until_ready(out)
    assert out.shape == (BATCH, N_NODES, 8), out.shape

    # per-graph f32 reference (exactly the PyTorch per-head semantics);
    # tolerance relaxed because the kernel feeds the MXU bf16 operands.
    for b in range(BATCH):
        ref = gnn_forward_reference(xb[b], edge_index, params, gnn_graph)
        err = float(jnp.max(jnp.abs(out[b] - ref)))
        assert jnp.allclose(out[b], ref, atol=5e-2, rtol=5e-2), (b, err)

    # single-graph module-signature path (B == 1 through the same kernel)
    out0 = jax.block_until_ready(gnn_forward(xb[0], edge_index, params, gnn_graph))
    ref0 = gnn_forward_reference(xb[0], edge_index, params, gnn_graph)
    assert out0.shape == (N_NODES, 8), out0.shape
    assert jnp.allclose(out0, ref0, atol=5e-2, rtol=5e-2), \
        float(jnp.max(jnp.abs(out0 - ref0)))

    print("KERNEL_OK")
</pallas_src>

<mosaic_0001>
module attributes {stable_mosaic.version = 11 : i64} {
  func.func @kernel(%arg0: i32, %arg1: memref<1x16x16xf32, #tpu.memory_space<vmem>>, %arg2: memref<16x16xbf16, #tpu.memory_space<vmem>>, %arg3: memref<16x1xf32, #tpu.memory_space<vmem>>, %arg4: memref<16x1xf32, #tpu.memory_space<vmem>>, %arg5: memref<16x64xbf16, #tpu.memory_space<vmem>>, %arg6: memref<1x64xf32, #tpu.memory_space<vmem>>, %arg7: memref<64x128xbf16, #tpu.memory_space<vmem>>, %arg8: memref<1x128xf32, #tpu.memory_space<vmem>>, %arg9: memref<1x16x128xf32, #tpu.memory_space<vmem>>) attributes {dimension_semantics = [#tpu.dimension_semantics<parallel>], iteration_bounds = array<i64: 4>, scalar_prefetch = 0 : i64, scratch_operands = 0 : i64, tpu.core_type = #tpu.core_type<tc>, window_params = [{transform_indices = @transform_0, window_bounds = array<i64: 1, 16, 16>}, {pipeline_mode = #tpu.pipeline_mode<synchronous>, transform_indices = @transform_1, window_bounds = array<i64: 16, 16>}, {pipeline_mode = #tpu.pipeline_mode<synchronous>, transform_indices = @transform_2, window_bounds = array<i64: 16, 1>}, {pipeline_mode = #tpu.pipeline_mode<synchronous>, transform_indices = @transform_3, window_bounds = array<i64: 16, 1>}, {pipeline_mode = #tpu.pipeline_mode<synchronous>, transform_indices = @transform_4, window_bounds = array<i64: 16, 64>}, {pipeline_mode = #tpu.pipeline_mode<synchronous>, transform_indices = @transform_5, window_bounds = array<i64: 1, 64>}, {pipeline_mode = #tpu.pipeline_mode<synchronous>, transform_indices = @transform_6, window_bounds = array<i64: 64, 128>}, {pipeline_mode = #tpu.pipeline_mode<synchronous>, transform_indices = @transform_7, window_bounds = array<i64: 1, 128>}, {transform_indices = @transform_8, window_bounds = array<i64: 1, 16, 128>}]} {
    %c0 = arith.constant 0 : index
    %c0_0 = arith.constant 0 : index
    %0 = vector.load %arg2[%c0, %c0_0] : memref<16x16xbf16, #tpu.memory_space<vmem>>, vector<16x16xbf16>
    %c0_1 = arith.constant 0 : index
    %c0_2 = arith.constant 0 : index
    %1 = vector.load %arg3[%c0_1, %c0_2] : memref<16x1xf32, #tpu.memory_space<vmem>>, vector<16x1xf32>
    %c0_3 = arith.constant 0 : index
    %c0_4 = arith.constant 0 : index
    %2 = vector.load %arg4[%c0_3, %c0_4] : memref<16x1xf32, #tpu.memory_space<vmem>>, vector<16x1xf32>
    %c0_5 = arith.constant 0 : index
    %c0_6 = arith.constant 0 : index
    %c0_7 = arith.constant 0 : index
    %3 = vector.load %arg1[%c0_5, %c0_6, %c0_7] : memref<1x16x16xf32, #tpu.memory_space<vmem>>, vector<1x16x16xf32>
    %4 = vector.shape_cast %3 : vector<1x16x16xf32> to vector<16x16xf32>
    %c0_8 = arith.constant 0 : index
    %c0_9 = arith.constant 0 : index
    %5 = vector.load %arg5[%c0_8, %c0_9] : memref<16x64xbf16, #tpu.memory_space<vmem>>, vector<16x64xbf16>
    %c0_10 = arith.constant 0 : index
    %c0_11 = arith.constant 0 : index
    %6 = vector.load %arg6[%c0_10, %c0_11] : memref<1x64xf32, #tpu.memory_space<vmem>>, vector<1x64xf32>
    %7 = arith.truncf %4 : vector<16x16xf32> to vector<16x16xbf16>
    %cst = arith.constant dense<0.000000e+00> : vector<16x16xf32>
    %8 = tpu.matmul %0, %7, %cst {dimension_numbers = #tpu.dot_dimension_numbers<[1], [0], [0], [1], [0, 0, 1, 1], [], []>} : vector<16x16xbf16>, vector<16x16xbf16>, vector<16x16xf32> -> vector<16x16xf32>
    %9 = arith.truncf %8 : vector<16x16xf32> to vector<16x16xbf16>
    %cst_12 = arith.constant dense<0.000000e+00> : vector<16x64xf32>
    %10 = tpu.matmul %9, %5, %cst_12 {dimension_numbers = #tpu.dot_dimension_numbers<[1], [0], [0], [1], [0, 0, 1, 1], [], []>} : vector<16x16xbf16>, vector<16x64xbf16>, vector<16x64xf32> -> vector<16x64xf32>
    %11 = vector.broadcast %1 : vector<16x1xf32> to vector<16x64xf32>
    %12 = vector.broadcast %6 : vector<1x64xf32> to vector<16x64xf32>
    %13 = arith.mulf %11, %12 : vector<16x64xf32>
    %14 = arith.addf %10, %13 : vector<16x64xf32>
    %cst_13 = arith.constant 0.000000e+00 : f32
    %15 = vector.broadcast %cst_13 : f32 to vector<16x64xf32>
    %16 = arith.maximumf %14, %15 : vector<16x64xf32>
    %c0_14 = arith.constant 0 : index
    %c0_15 = arith.constant 0 : index
    %17 = vector.load %arg7[%c0_14, %c0_15] : memref<64x128xbf16, #tpu.memory_space<vmem>>, vector<64x128xbf16>
    %c0_16 = arith.constant 0 : index
    %c0_17 = arith.constant 0 : index
    %18 = vector.load %arg8[%c0_16, %c0_17] : memref<1x128xf32, #tpu.memory_space<vmem>>, vector<1x128xf32>
    %19 = arith.truncf %16 : vector<16x64xf32> to vector<16x64xbf16>
    %cst_18 = arith.constant dense<0.000000e+00> : vector<16x64xf32>
    %20 = tpu.matmul %0, %19, %cst_18 {dimension_numbers = #tpu.dot_dimension_numbers<[1], [0], [0], [1], [0, 0, 1, 1], [], []>} : vector<16x16xbf16>, vector<16x64xbf16>, vector<16x64xf32> -> vector<16x64xf32>
    %21 = vector.broadcast %2 : vector<16x1xf32> to vector<16x64xf32>
    %22 = arith.mulf %20, %21 : vector<16x64xf32>
    %23 = arith.truncf %22 : vector<16x64xf32> to vector<16x64xbf16>
    %cst_19 = arith.constant dense<0.000000e+00> : vector<16x128xf32>
    %24 = tpu.matmul %23, %17, %cst_19 {dimension_numbers = #tpu.dot_dimension_numbers<[1], [0], [0], [1], [0, 0, 1, 1], [], []>} : vector<16x64xbf16>, vector<64x128xbf16>, vector<16x128xf32> -> vector<16x128xf32>
    %25 = vector.broadcast %18 : vector<1x128xf32> to vector<16x128xf32>
    %26 = arith.addf %24, %25 : vector<16x128xf32>
    %27 = math.tanh %26 : vector<16x128xf32>
    %c0_20 = arith.constant 0 : index
    %c0_21 = arith.constant 0 : index
    %c0_22 = arith.constant 0 : index
    %28 = vector.load %arg9[%c0_20, %c0_21, %c0_22] : memref<1x16x128xf32, #tpu.memory_space<vmem>>, vector<1x16x128xf32>
    %29 = vector.shape_cast %28 : vector<1x16x128xf32> to vector<16x128xf32>
    %30 = vector.shape_cast %27 : vector<16x128xf32> to vector<1x16x128xf32>
    tpu.vector_store %arg9[%c0_20, %c0_21, %c0_22], %30 {strides = array<i32>} : memref<1x16x128xf32, #tpu.memory_space<vmem>>, vector<1x16x128xf32>,
    return
  }
  func.func @transform_0(%arg0: i32) -> (i32, i32, i32) {
    %c0_i32 = arith.constant 0 : i32
    %c0_i32_0 = arith.constant 0 : i32
    %c0_i32_1 = arith.constant 0 : i32
    return %arg0, %c0_i32, %c0_i32_0 : i32, i32, i32
  }
  func.func @transform_1(%arg0: i32) -> (i32, i32) {
    %c0_i32 = arith.constant 0 : i32
    %c0_i32_0 = arith.constant 0 : i32
    %c0_i32_1 = arith.constant 0 : i32
    return %c0_i32, %c0_i32_0 : i32, i32
  }
  func.func @transform_2(%arg0: i32) -> (i32, i32) {
    %c0_i32 = arith.constant 0 : i32
    %c0_i32_0 = arith.constant 0 : i32
    %c0_i32_1 = arith.constant 0 : i32
    return %c0_i32, %c0_i32_0 : i32, i32
  }
  func.func @transform_3(%arg0: i32) -> (i32, i32) {
    %c0_i32 = arith.constant 0 : i32
    %c0_i32_0 = arith.constant 0 : i32
    %c0_i32_1 = arith.constant 0 : i32
    return %c0_i32, %c0_i32_0 : i32, i32
  }
  func.func @transform_4(%arg0: i32) -> (i32, i32) {
    %c0_i32 = arith.constant 0 : i32
    %c0_i32_0 = arith.constant 0 : i32
    %c0_i32_1 = arith.constant 0 : i32
    return %c0_i32, %c0_i32_0 : i32, i32
  }
  func.func @transform_5(%arg0: i32) -> (i32, i32) {
    %c0_i32 = arith.constant 0 : i32
    %c0_i32_0 = arith.constant 0 : i32
    %c0_i32_1 = arith.constant 0 : i32
    return %c0_i32, %c0_i32_0 : i32, i32
  }
  func.func @transform_6(%arg0: i32) -> (i32, i32) {
    %c0_i32 = arith.constant 0 : i32
    %c0_i32_0 = arith.constant 0 : i32
    %c0_i32_1 = arith.constant 0 : i32
    return %c0_i32, %c0_i32_0 : i32, i32
  }
  func.func @transform_7(%arg0: i32) -> (i32, i32) {
    %c0_i32 = arith.constant 0 : i32
    %c0_i32_0 = arith.constant 0 : i32
    %c0_i32_1 = arith.constant 0 : i32
    return %c0_i32, %c0_i32_0 : i32, i32
  }
  func.func @transform_8(%arg0: i32) -> (i32, i32, i32) {
    %c0_i32 = arith.constant 0 : i32
    %c0_i32_0 = arith.constant 0 : i32
    %c0_i32_1 = arith.constant 0 : i32
    return %arg0, %c0_i32, %c0_i32_0 : i32, i32, i32
  }
}

</mosaic_0001>

<bundles_post_ra>
// kernel: tpu_custom_call.1
= control target key start
LH: loop header
LB: loop body
LE: loop exit
PB: predicated region body
PF: predicated region fallthrough
CT: control target
= control target key end

     0   :  { %s1262_s0 = inlined_call_operand.hbm [shape: f32[4,16,16], index: 0, kind: input, shape index: {}]   ;;  %s1263_s1 = inlined_call_operand.vmem [shape: bf16[16,16], index: 1, kind: input, shape index: {}]   ;;  %s1264_s2 = inlined_call_operand.vmem [shape: f32[16,1], index: 2, kind: input, shape index: {}]   ;;  %s1265_s3 = inlined_call_operand.vmem [shape: f32[16,1], index: 3, kind: input, shape index: {}]   ;;  %s1266_s4 = inlined_call_operand.hbm [shape: bf16[16,64], index: 4, kind: input, shape index: {}]   ;;  %s1267_s5 = inlined_call_operand.vmem [shape: f32[1,64], index: 5, kind: input, shape index: {}]   ;;  %s1268_s6 = inlined_call_operand.vmem [shape: bf16[64,128], index: 6, kind: input, shape index: {}]   ;;  %s1269_s7 = inlined_call_operand.vmem [shape: f32[1,128], index: 7, kind: input, shape index: {}]   ;;  %s1270_s8 = inlined_call_operand.hbm [shape: f32[4,16,128], index: 8, kind: output, shape index: {}]  }
   0x1   :  { %1277 = sst [smem:[#allocation12_spill]] %s1266_s4 }
   0x2   :  { %13 = vsyncpa [#allocation3], 0 }
   0x3   :  { %15 = vsyncpa [#allocation3 + $0x1], 0 }
   0x4   :  { %16 = vsyncpa [#allocation6], 0 }
   0x5   :  { %17 = vsyncpa [#allocation4], 0 }
   0x6   :  { %19 = vsyncpa [#allocation4 + $0x1], 0  ;;  %s1043_s27 = smov 0   ;;  %s1045_s28 = smov 0  }
   0x7   :  { %s1047_s29 = smov 0   ;;  %s1049_s30 = smov 0  }
   0x8 LB: > { %s1064_s9 = sadd.s32 4294967295, %s984_s30   ;;  %s713_s10 = sadd.s32 4294967294, %s984_s30   ;;  %s984_s30 = sphi %s1049_s30, %s1293_s30   ;;  %s980_s29 = sphi %s1047_s29, %s1296_s29   ;;  %s976_s28 = sphi %s1045_s28, %s1295_s28   ;;  %s972_s27 = sphi %s1043_s27, %s1294_s27  }
   0x9   : > { %p45_p0 = scmp.ne.s32.totalorder %s976_s28, %s972_s27  ;;  %p1273_p1 = scmp.eq.s32.totalorder %s1064_s9, 0 }
   0xa   : > { %p222_p3 = scmp.eq.s32.totalorder %s713_s10, 3  ;;  %p714_p5 = scmp.ge.s32.totalorder %s984_s30, 1 }
   0xb   : > { %p1073_p4 = por %p1273_p1, %p45_p0  ;;  %p229_p7 = scmp.lt.s32.totalorder %s984_s30, 5 }
   0xc   : > { %p1078_p6 = por %p222_p3, %p45_p0  ;;  %s986_s14 = smov [#allocation5]  }
   0xd   : > { %s1278_s11 = scalar_select %p1073_p4, 1, 0 }
   0xe   : > { %s1279_s12 = scalar_select %p1078_p6, 1, 0 }
   0xf   : > { %p1083_p8 = pnand %p714_p5, %p229_p7  ;;  %s250_s15 = sshll.u32 %s986_s14, 4  ;;  %s251_s15 = int_to_ptr.vmem [resolvable:$true] %s250_s15 }
  0x10   : > { %s1096_s17 = sadd.s32 1, %s984_s30   ;;  %s32_s18 = sadd.s32 1, %s980_s29 }
  0x11   : > { %s1280_s13 = scalar_select %p1083_p8, 1, 0 }
  0x12   : > { %p792_p9 = pneg %p1083_p8  ;;  %1282 = sst [smem:[#allocation11_spill]] %s1096_s17 }
  0x13   : > { %s29_s19 = ssub.s32 %s984_s30, %s1096_s17  ;;  %s873_s20 = scalar_lea.vmem %s251_s15, 128 }
  0x14   : > { %p1091_p10 = pnand %p792_p9, %p1273_p1  ;;  %p874_p12 = scmp.ne.s32.totalorder %s251_s15, %s873_s20 }
  0x15   : > { %p881_p3 = scmp.lt.s32.totalorder %s251_s15, %s251_s15  ;;  %p882_p5 = scmp.lt.s32.totalorder %s873_s20, %s873_s20 }
  0x16   : > { %p864_p11 = pneg %p1091_p10 }
  0x17   : > { %p883_p7 = por %p882_p5, %p881_p3 }
  0x18   : > { %p876_p13 = pnand %p874_p12, %p864_p11 }
  0x1a   : > { %p877_p0 = pneg %p876_p13 }
  0x1c   : > { %p884_p2 = pnand %p883_p7, %p877_p0 }
  0x1e   : > { %887 = shalt.err (!%p884_p2)
}
  0x1f   : > { %s987_s21 = smov 64   ;;  %s988_s22 = smov 4  }
  0x20   : > { %s1283_s4 = sld [smem:[#allocation12_spill]]  ;;  %p30_p9 = scmp.eq.s32.totalorder %s29_s19, 0 }
  0x21   : > { %p39_p11 = scmp.ne.s32.totalorder %s980_s29, %s976_s28  ;;  %p40_p12 = scmp.eq.s32.totalorder %s984_s30, 0 }
  0x22   : > { %p805_p2 = scmp.lt.s32.totalorder %s984_s30, 4  ;;  %p1284_p0 = scmp.eq.s32.totalorder %s1064_s9, 3 }
  0x23   : > { %s1113_s25 = scalar_select %p30_p9, %s980_s29, %s32_s18  }
  0x24   : > { %p41_p13 = por %p40_p12, %p39_p11  ;;  %p1117_p3 = por %p1284_p0, %p39_p11 }
  0x25   : > { %s273_s10 = sand.u32 1, %s980_s29   ;;  %s741_s14 = sshll.u32 %s984_s30, 8 }
  0x26   : > { %795 = dma.hbm_to_vmem [thread:$0]  (!%p1091_p10), %s1283_s4, 128, %s251_s15, [#allocation6], %s987_s21, %s987_s21, %s988_s22  }
  0x27   : > { %s1285_s26 = scalar_select %p1117_p3, 1, 0 }
  0x28   : > { %s717_s20 = sshll.u32 %s273_s10, 4  ;;  %s1126_s23 = scalar_lea.hbm %s1262_s0, %s741_s14 }
  0x29   : > { %s277_s15 = scalar_lea.vmem [#allocation2], %s717_s20  ;;  %p1128_p10 = pnand %p805_p2, %p41_p13 }
  0x2a   : > { %s284_s18 = sshll.u32 %s277_s15, 4  ;;  %s1134_s21 = scalar_lea.sflag [#allocation3], %s273_s10  ;;  %s1132_s18 = int_to_ptr.vmem [resolvable:$true] %s284_s18 }
  0x2b   : > { %s888_s22 = scalar_lea.hbm %s1126_s23, 256  ;;  %p890_p7 = pneg %p1128_p10 }
  0x2c   : > { %p889_p5 = scmp.ne.s32.totalorder %s1126_s23, %s888_s22  ;;  %s893_s14 = scalar_lea.hbm %s1262_s0, 1024 }
  0x2d   : > { %p894_p12 = scmp.lt.s32.totalorder %s1126_s23, %s1262_s0  ;;  %p895_p2 = scmp.lt.s32.totalorder %s893_s14, %s888_s22 }
  0x2e   : > { %p891_p9 = pnand %p890_p7, %p889_p5 }
  0x2f   : > { %p896_p13 = por %p895_p2, %p894_p12 }
  0x30   : > { %p892_p11 = pneg %p891_p9 }
  0x32   : > { %p897_p0 = pnand %p896_p13, %p892_p11 }
  0x34   : > { %900 = shalt.err (!%p897_p0)
}
  0x35   : > { %s901_s10 = scalar_lea.vmem %s1132_s18, 256  ;;  %s989_s15 = smov [#allocation2]  }
  0x36   : > { %p902_p1 = scmp.ne.s32.totalorder %s1132_s18, %s901_s10  ;;  %s906_s4 = sshll.u32 %s989_s15, 4  ;;  %s907_s4 = int_to_ptr.vmem [resolvable:$false] %s906_s4 }
  0x37   : > { %s908_s17 = scalar_lea.vmem %s907_s4, 512  ;;  %p909_p9 = scmp.lt.s32.totalorder %s1132_s18, %s907_s4 }
  0x38   : > { %p904_p6 = pnand %p902_p1, %p890_p7  ;;  %p910_p3 = scmp.lt.s32.totalorder %s908_s17, %s901_s10 }
  0x3a   : > { %p905_p5 = pneg %p904_p6  ;;  %p911_p4 = por %p910_p3, %p909_p9 }
  0x3c   : > { %p912_p8 = pnand %p911_p4, %p905_p5 }
  0x3e   : > { %915 = shalt.err (!%p912_p8)
}
  0x3f   : > { %s990_s22 = smov 128   ;;  %s991_s24 = smov 8  }
  0x40   : > { %799 = dma.hbm_to_vmem [thread:$0]  (!%p1128_p10), %s1126_s23, 256, %s1132_s18, %s1134_s21, %s990_s22, %s990_s22, %s991_s24  }
  0x41   : > { %p1287_p1 = scmp.ne.s32.totalorder %s1280_s13, 0 }
  0x42   : > { %s1158_s14 = sand.u32 (!%p1287_p1), 1, %s976_s28   ;;  %p1288_p4 = scmp.ne.s32.totalorder (!%p1287_p1), %s1278_s11, 0 }
  0x43   : > { %296 = sbr.rel (%p1287_p1) target bundleno = 915 (0x393), region = 52  ;;  %s721_s4 = sshll.u32 (!%p1287_p1), %s1158_s14, 4 }
  0x44   : > { %s299_s20 = scalar_lea.sflag (!%p1287_p1), [#allocation3], %s1158_s14  ;;  %s302_s16 = scalar_lea.vmem (!%p1287_p1), [#allocation2], %s721_s4 }
  0x48   : > { %959 = dma.done.wait (%p1288_p4), %s299_s20, 256  }
  0x49   : > { %961 = vsyncadd (%p1288_p4), %s299_s20, 4294967040  ;;  %p1289_p6 = scmp.eq.s32.totalorder %s1064_s9, 0 }
  0x4b   : > { %963 = dma.done.wait (%p1289_p6), [#allocation6], 128   ;;  %p1290_p8 = pmov %p1289_p6 }
  0x4c   : > { %v992_v0 = vmov 0.0   ;;  %vm993_vm0 = vmmov 0   ;;  %v346_v1 = vld [vmem:[%s302_s16] sm:$0xff]  ;;  %v347_v2 = vld [vmem:[%s302_s16 + $0x8] sm:$0xff]  ;;  %vm357_vm1 = vcmask 130048   ;;  %v994_v7 = vmov 0  }
  0x4d   : > { %965 = vsyncadd (%p1290_p8), [#allocation6], 4294967168  ;;  %754 = vmatprep.subr.bf16.mxu0 %v992_v0  ;;  %756 = vmatprep.mubr.msk.bf16.mxu0 %vm993_vm0, %v992_v0  ;;  %v351_v3 = vpack.c.bf16 %v347_v2, %v346_v1  ;;  %v852_v4 = vld [vmem:[%s1263_s1] sm:$0xff]   ;;  %v343_v8 = vld [vmem:[%s1264_s2 + $0x8] sm:$0xff]  ;;  %vm567_vm2 = vcmask 523264   ;;  %s742_s22 = sshll.u32 %s1064_s9, 8 }
  0x4e   : > { %760 = vmatprep.subr.bf16.mxu1 %v992_v0  ;;  %762 = vmatprep.mubr.msk.bf16.mxu1 %vm993_vm0, %v992_v0  ;;  %v853_v5 = vld [vmem:[#allocation5] sm:$0xff]   ;;  %v854_v15 = vld [vmem:[%s1268_s6 + $0x18] sm:$0xff]   ;;  %v345_v16 = vld [vmem:[%s1265_s3 + $0x8] sm:$0xff]  ;;  %s338_s24 = scalar_lea.vmem [#allocation7], %s721_s4  ;;  %s1218_s11 = scalar_lea.hbm %s1270_s8, %s742_s22 }
  0x4f   : > { %755 = vmatpush3.bf16.msra.mxu0 %v351_v3  ;;  %761 = vmatpush3.bf16.msra.mxu1 %v853_v5  ;;  %v342_v6 = vld [vmem:[%s1264_s2] sm:$0xff]  ;;  %v855_v17 = vld [vmem:[%s1268_s6 + $0x10] sm:$0xff]   ;;  %v856_v32 = vld [vmem:[%s1268_s6 + $0x8] sm:$0xff]   ;;  %s630_s20 = sshll.u32 %s338_s24, 4  ;;  %s617_s23 = scalar_lea.sflag [#allocation4], %s1158_s14  ;;  %s1220_s20 = int_to_ptr.vmem [resolvable:$true] %s630_s20 }
  0x50   : > { %766 = vmatprep.subr.bf16.mxu0 %v992_v0  ;;  %772 = vmatprep.subr.bf16.mxu1 %v992_v0  ;;  %v344_v14 = vld [vmem:[%s1265_s3] sm:$0xff]  ;;  %s916_s18 = scalar_lea.vmem %s1220_s20, 256  ;;  %p1291_p10 = scmp.ne.s32.totalorder %s1285_s26, 0 }
  0x51   : > { %850 = vset.pattern.permute.xlu0 %v994_v7  ;;  %851 = vset.pattern.permute.xlu1 %v994_v7  ;;  %v726_v19 = vld [vmem:[%s1267_s5] ss:$0 sm:$0xff]  ;;  %p917_p3 = scmp.ne.s32.totalorder %s1220_s20, %s916_s18  ;;  %s995_s9 = smov [#allocation7]  }
  0x52   : > { %757 = vmatmul.mubr.msk.bf16.vlgmr.msra.gmra.mxu0 %vm357_vm1, %v852_v4  ;;  %405 = vperm.xlu0 %850, %v342_v6   ;;  %v857_v33 = vld [vmem:[%s1268_s6] sm:$0xff]   ;;  %s920_s4 = sshll.u32 %s995_s9, 4  ;;  %s921_s4 = int_to_ptr.vmem [resolvable:$false] %s920_s4 }
  0x53   : > { %768 = vmatprep.mubr.msk.bf16.mxu0 %vm993_vm0, %v992_v0  ;;  %526 = vperm.xlu1 %851, %v344_v14   ;;  %v730_v43 = vld [vmem:[%s1269_s7] ss:$0 sm:$0xff]  ;;  %p918_p7 = pnand %p917_p3, %p1291_p10  ;;  %s922_s19 = scalar_lea.vmem %s921_s4, 512 }
  0x54   : > { %p923_p12 = scmp.lt.s32.totalorder %s1220_s20, %s921_s4  ;;  %p924_p2 = scmp.lt.s32.totalorder %s922_s19, %s916_s18 }
  0x55   : > { %p919_p11 = pneg %p918_p7 }
  0x56   : > { %410 = vperm.xlu0 %850, %v343_v8   ;;  %p925_p13 = por %p924_p2, %p923_p12 }
  0x57   : > { %531 = vperm.xlu1 %851, %v345_v16  }
  0x58   : > { %p926_p0 = pnand %p925_p13, %p919_p11 }
  0xcd   : > { %v406_v18 = vpop.permute.xlu0 %405 }
  0xce   : > { %v419_v20 = vmul.f32 %v726_v19, %v406_v18  ;;  %v527_v34 = vpop.permute.xlu1 %526 }
  0xd1   : > { %v411_v21 = vpop.permute.xlu0 %410 }
  0xd2   : > { %v420_v24 = vmul.f32 %v726_v19, %v411_v21  ;;  %v532_v37 = vpop.permute.xlu1 %531 }
 0x112   : > { %v395_v9 = vpop.f32.mrf.mxu0 }
 0x114   : > { %v758_v10 = vpop.f32.mrf.mxu0 }
 0x116   : > { %v398_v11 = vpop.f32.mrf.mxu0 }
 0x117   : > { %v402_v12 = vpack.c.bf16 %v398_v11, %v395_v9 }
 0x118   : > { %v759_v13 = vpop.f32.mrf.mxu0 }
 0x119   : > { %763 = vmatmul.mubr.msk.bf16.vlgmr.msra.gmra.mxu1 %vm357_vm1, %v402_v12 }
 0x11a   : > { %780 = vmatprep.mubr.msk.bf16.mxu1 %vm993_vm0, %v992_v0  ;;  %773 = vmatpush3.bf16.msra.mxu1 %v854_v15 }
 0x11b   : > { %774 = vmatprep.subr.bf16.mxu1 %v992_v0 }
 0x11e   : > { %775 = vmatpush3.bf16.msra.mxu1 %v855_v17 }
 0x11f   : > { %776 = vmatprep.subr.bf16.mxu1 %v992_v0 }
 0x122   : > { %777 = vmatpush3.bf16.msra.mxu1 %v856_v32 }
 0x123   : > { %778 = vmatprep.subr.bf16.mxu1 %v992_v0 }
 0x126   : > { %779 = vmatpush3.bf16.msra.mxu1 %v857_v33 }
 0x1d9   : > { %v464_v22 = vpop.f32.mrf.mxu1 }
 0x1da   : > { %v465_v25 = vadd.f32 %v464_v22, %v419_v20 }
 0x1db   : > { %v764_v23 = vpop.f32.mrf.mxu1 }
 0x1dc   : > { %v471_v29 = vmax.f32 %v465_v25, 0.0 }
 0x1dd   : > { %v467_v26 = vpop.f32.mrf.mxu1 }
 0x1de   : > { %v468_v27 = vadd.f32 %v467_v26, %v420_v24 }
 0x1df   : > { %v765_v28 = vpop.f32.mrf.mxu1 }
 0x1e0   : > { %v472_v30 = vmax.f32 %v468_v27, 0.0 }
 0x1e2   : > { %v482_v31 = vpack.c.bf16 %v472_v30, %v471_v29 }
 0x1e4   : > { %767 = vmatpush3.bf16.msra.mxu0 %v482_v31 }
 0x1e7   : > { %769 = vmatmul.mubr.msk.bf16.vlgmr.msra.gmra.mxu0 %vm357_vm1, %v852_v4 }
 0x2a7   : > { %v517_v35 = vpop.f32.mrf.mxu0 }
 0x2a8   : > { %v534_v39 = vmul.f32 %v527_v34, %v517_v35 }
 0x2a9   : > { %v770_v36 = vpop.f32.mrf.mxu0 }
 0x2ab   : > { %v520_v38 = vpop.f32.mrf.mxu0 }
 0x2ac   : > { %v535_v40 = vmul.f32 %v532_v37, %v520_v38 }
 0x2ad   : > { %v771_v41 = vpop.f32.mrf.mxu0 }
 0x2ae   : > { %v536_v42 = vpack.c.bf16 %v535_v40, %v534_v39 }
 0x2b0   : > { %781 = vmatmul.mubr.msk.bf16.vlgmr.msra.gmra.mxu1 %vm567_vm2, %v536_v42 }
 0x370   : > { %v605_v44 = vpop.f32.mrf.mxu1 }
 0x371   : > { %v606_v45 = vadd.f32 %v730_v43, %v605_v44 }
 0x372   : > { %v782_v46 = vpop.f32.mrf.mxu1 }
 0x373   : > { %858 = vtanh.f32 %v606_v45 }
 0x374   : > { %v608_v47 = vpop.f32.mrf.mxu1 }
 0x375   : > { %v609_v48 = vadd.f32 %v730_v43, %v608_v47 }
 0x376   : > { %v783_v49 = vpop.f32.mrf.mxu1 }
 0x377   : > { %860 = vtanh.f32 %v609_v48 }
 0x380   : > { %v859_v50 = vpop.eup %858 }
 0x381   : > { %614 = vst [vmem:[%s338_s24] sm:$0xff] %v859_v50 }
 0x384   : > { %v861_v51 = vpop.eup %860 }
 0x385   : > { %615 = vst [vmem:[%s338_s24 + $0x8] sm:$0xff] %v861_v51 }
 0x386   : > { %929 = shalt.err (!%p926_p0)
}
 0x387   : > { %s930_s21 = scalar_lea.hbm %s1218_s11, 256  ;;  %s934_s17 = scalar_lea.hbm %s1270_s8, 1024 }
 0x388   : > { %p931_p5 = scmp.ne.s32.totalorder %s1218_s11, %s930_s21  ;;  %p935_p4 = scmp.lt.s32.totalorder %s1218_s11, %s1270_s8 }
 0x389   : > { %p936_p6 = scmp.lt.s32.totalorder %s934_s17, %s930_s21 }
 0x38a   : > { %p932_p9 = pnand %p931_p5, %p1291_p10 }
 0x38b   : > { %p937_p8 = por %p936_p6, %p935_p4 }
 0x38c   : > { %p933_p1 = pneg %p932_p9 }
 0x38e   : > { %p938_p3 = pnand %p937_p8, %p933_p1 }
 0x390   : > { %941 = shalt.err (!%p938_p3)
}
 0x391   : > { %s996_s16 = smov 128   ;;  %s997_s13 = smov 8  }
 0x392   : > { %790 = dma.vmem_to_hbm [thread:$0]  (%p1291_p10), %s1220_s20, 256, %s1218_s11, %s617_s23, %s996_s16, %s996_s16, %s997_s13  }
 0x393 PF: > { %p807_p7 = scmp.ge.s32.totalorder %s984_s30, 2  ;;  %s645_s18 = sand.u32 1, %s972_s27  }
 0x394   : > { %p1292_p11 = scmp.ne.s32.totalorder %s1279_s12, 0  ;;  %s646_s9 = scalar_lea.sflag [#allocation4], %s645_s18 }
 0x396   : > { %p801_p12 = pnand %p807_p7, %p1292_p11 }
 0x398   : > { %p802_p2 = pneg %p801_p12 }
 0x39a   : > { %967 = dma.done.wait (%p802_p2), %s646_s9, 256  }
 0x39b   : > { %969 = vsyncadd (%p802_p2), %s646_s9, 4294967040  ;;  %s1293_s30 = sld [smem:[#allocation11_spill]]  ;;  %s1294_s27 = smov %s976_s28 }
 0x39c   : > { %s1295_s28 = smov %s980_s29  ;;  %s1296_s29 = smov %s1113_s25 }
 0x3a1   : > { %p22_p13 = scmp.ge.s32.totalorder %s1293_s30, 6  }
 0x3a3   :  { %24 = sbr.rel (!%p22_p13) target bundleno = 8 (0x8), region = 101 }
 0x3a8   :  { %651 = vsyncpa [#allocation3], 1 }
 0x3a9   :  { %653 = vsyncpa [#allocation3 + $0x1], 1 }
 0x3aa   :  { %654 = vsyncpa [#allocation6], 1 }
 0x3ab   :  { %655 = vsyncpa [#allocation4], 1 }
 0x3ac   :  { %657 = vsyncpa [#allocation4 + $0x1], 1 }

</bundles_post_ra>
